<compile_context>
chip_gen: v5e
topology: v5e:2x2
jax: 0.10.0
libtpu: 0.0.40
codegen_flags: <defaults>
</compile_context>

<pallas_src>
import math

import jax
import jax.numpy as jnp
from jax.experimental import pallas as pl
from jax.experimental.pallas import tpu as pltpu


def classblock_kernel(x_ref, w1_ref, shift_ref, w2_ref, b2_ref, o_ref):
    # First Linear on the MXU: bf16 inputs, f32 accumulation. BN scale and the
    # Linear bias are pre-folded into w1/shift by the wrapper.
    h = jnp.dot(x_ref[...], w1_ref[...], preferred_element_type=jnp.float32)
    # Folded (bias + BN shift), then ReLU — kept in f32 (v5e has no bf16 VPU).
    h = jnp.maximum(h + shift_ref[...], 0.0)
    # Dropout is identity at inference.
    # Classifier Linear on the MXU (bf16 inputs, f32 accumulation) + bias.
    y = jnp.dot(h.astype(w2_ref.dtype), w2_ref[...],
                preferred_element_type=jnp.float32) + b2_ref[...]
    o_ref[...] = y.astype(o_ref.dtype)


def class_block_forward(x, w1, b1, gamma, beta, running_mean, running_var,
                        w2, b2, *, eps=1e-5, block_b=256):
    B, D = x.shape
    H = w1.shape[1]
    C = w2.shape[1]

    # ---- Constant folding (once, outside the kernel) ----------------------
    # BN (eval) as per-feature affine, folded together with b1 into W1/shift:
    #   h = relu(x @ (W1 * scale) + (b1 * scale + shift))
    inv_std = 1.0 / jnp.sqrt(running_var.astype(jnp.float32) + eps)
    scale = gamma.astype(jnp.float32) * inv_std
    shift = beta.astype(jnp.float32) - running_mean.astype(jnp.float32) * scale
    w1_f = w1.astype(jnp.float32) * scale[None, :]
    shift_f = (b1.astype(jnp.float32) * scale + shift).reshape(1, H)

    # ---- Lane-dense output: pad class_num up to a multiple of 128 ---------
    C_pad = max(128, pl.cdiv(C, 128) * 128)
    w2_p = jnp.zeros((H, C_pad), jnp.float32).at[:, :C].set(w2.astype(jnp.float32))
    b2_p = jnp.zeros((1, C_pad), jnp.float32).at[0, :C].set(b2.astype(jnp.float32))

    # ---- Batch tiling so Pallas double-buffers x / out DMAs ---------------
    TB = int(min(block_b, max(8, pl.cdiv(B, 8) * 8)))
    B_pad = pl.cdiv(B, TB) * TB
    x_f = x.astype(jnp.float32)
    if B_pad != B:
        x_f = jnp.pad(x_f, ((0, B_pad - B), (0, 0)))

    # bf16 MXU operands (accumulation stays f32 inside the kernel).
    x_bf = x_f.astype(jnp.bfloat16)
    w1_bf = w1_f.astype(jnp.bfloat16)
    w2_bf = w2_p.astype(jnp.bfloat16)

    out = pl.pallas_call(
        classblock_kernel,
        out_shape=jax.ShapeDtypeStruct((B_pad, C_pad), jnp.float32),
        grid=(B_pad // TB,),
        in_specs=[
            pl.BlockSpec((TB, D), lambda i: (i, 0)),      # x batch tile
            pl.BlockSpec((D, H), lambda i: (0, 0)),       # folded W1 (resident)
            pl.BlockSpec((1, H), lambda i: (0, 0)),       # folded b1 + BN shift
            pl.BlockSpec((H, C_pad), lambda i: (0, 0)),   # padded W2 (resident)
            pl.BlockSpec((1, C_pad), lambda i: (0, 0)),   # padded b2
        ],
        out_specs=pl.BlockSpec((TB, C_pad), lambda i: (i, 0)),
        compiler_params=pltpu.CompilerParams(
            dimension_semantics=("parallel",),
            # Budgeted for v7x (64 MiB total / 32 MiB scoped default); these
            # shapes use far less, but be explicit so scaled-up reuse is safe.
            vmem_limit_bytes=32 * 1024 * 1024,
        ),
    )(x_bf, w1_bf, shift_f, w2_bf, b2_p)

    return out[:B, :C]


def init_params(key, input_dim, class_num, num_bottleneck):
    k1, k2, k3 = jax.random.split(key, 3)

    # add_block Linear: kaiming_normal_(a=0, mode='fan_out') on a (out, in)
    # weight => std = sqrt(2 / out_features). Bias = 0.
    std1 = math.sqrt(2.0 / num_bottleneck)
    w1 = std1 * jax.random.normal(k1, (input_dim, num_bottleneck), jnp.float32)
    b1 = jnp.zeros((num_bottleneck,), jnp.float32)

    # BatchNorm1d: weight ~ N(1.0, 0.02), bias = 0, running stats = (0, 1).
    gamma = 1.0 + 0.02 * jax.random.normal(k2, (num_bottleneck,), jnp.float32)
    beta = jnp.zeros((num_bottleneck,), jnp.float32)
    running_mean = jnp.zeros((num_bottleneck,), jnp.float32)
    running_var = jnp.ones((num_bottleneck,), jnp.float32)

    # classifier Linear: weight ~ N(0, 0.001), bias = 0.
    w2 = 0.001 * jax.random.normal(k3, (num_bottleneck, class_num), jnp.float32)
    b2 = jnp.zeros((class_num,), jnp.float32)

    return w1, b1, gamma, beta, running_mean, running_var, w2, b2


if __name__ == "__main__":
    input_dim = 32
    class_num = 16
    num_bottleneck = 512   # module default
    batch = 8

    key = jax.random.PRNGKey(0)
    kx, kp = jax.random.split(key)
    x = jax.random.normal(kx, (batch, input_dim), jnp.float32)
    params = init_params(kp, input_dim, class_num, num_bottleneck)

    out = class_block_forward(x, *params)
    out = jax.block_until_ready(out)
    assert out.shape == (batch, class_num)

    w1, b1, gamma, beta, rm, rv, w2, b2 = params

    # Reference 1: same bf16-input / f32-accumulate math in pure JAX (tight).
    inv_std = 1.0 / jnp.sqrt(rv + 1e-5)
    scale = gamma * inv_std
    shift = beta - rm * scale
    w1_bf = (w1 * scale[None, :]).astype(jnp.bfloat16)
    shift_f = b1 * scale + shift
    h_ref = jnp.maximum(
        jnp.dot(x.astype(jnp.bfloat16), w1_bf,
                preferred_element_type=jnp.float32) + shift_f, 0.0)
    ref_bf16 = jnp.dot(h_ref.astype(jnp.bfloat16), w2.astype(jnp.bfloat16),
                       preferred_element_type=jnp.float32) + b2
    assert jnp.allclose(out, ref_bf16, atol=1e-4, rtol=1e-3)

    # Reference 2: full-f32 module semantics (loose, accounts for bf16 cast).
    h = x @ w1 + b1
    h = gamma * (h - rm) / jnp.sqrt(rv + 1e-5) + beta
    h = jnp.maximum(h, 0.0)
    ref_f32 = h @ w2 + b2
    assert jnp.allclose(out, ref_f32, atol=2e-3, rtol=2e-2)

    print("KERNEL_OK")
</pallas_src>

<mosaic_0001>
module attributes {stable_mosaic.version = 11 : i64} {
  func.func @classblock_kernel(%arg0: i32, %arg1: memref<8x32xbf16, #tpu.memory_space<vmem>>, %arg2: memref<32x512xbf16, #tpu.memory_space<vmem>>, %arg3: memref<1x512xf32, #tpu.memory_space<vmem>>, %arg4: memref<512x128xbf16, #tpu.memory_space<vmem>>, %arg5: memref<1x128xf32, #tpu.memory_space<vmem>>, %arg6: memref<8x128xf32, #tpu.memory_space<vmem>>) attributes {dimension_semantics = [#tpu.dimension_semantics<parallel>], iteration_bounds = array<i64: 1>, scalar_prefetch = 0 : i64, scratch_operands = 0 : i64, tpu.core_type = #tpu.core_type<tc>, window_params = [{transform_indices = @transform_0, window_bounds = array<i64: 8, 32>}, {pipeline_mode = #tpu.pipeline_mode<synchronous>, transform_indices = @transform_1, window_bounds = array<i64: 32, 512>}, {pipeline_mode = #tpu.pipeline_mode<synchronous>, transform_indices = @transform_2, window_bounds = array<i64: 1, 512>}, {pipeline_mode = #tpu.pipeline_mode<synchronous>, transform_indices = @transform_3, window_bounds = array<i64: 512, 128>}, {pipeline_mode = #tpu.pipeline_mode<synchronous>, transform_indices = @transform_4, window_bounds = array<i64: 1, 128>}, {transform_indices = @transform_5, window_bounds = array<i64: 8, 128>}]} {
    %c0 = arith.constant 0 : index
    %c0_0 = arith.constant 0 : index
    %0 = vector.load %arg1[%c0, %c0_0] : memref<8x32xbf16, #tpu.memory_space<vmem>>, vector<8x32xbf16>
    %c0_1 = arith.constant 0 : index
    %c0_2 = arith.constant 0 : index
    %1 = vector.load %arg2[%c0_1, %c0_2] : memref<32x512xbf16, #tpu.memory_space<vmem>>, vector<32x512xbf16>
    %cst = arith.constant dense<0.000000e+00> : vector<8x512xf32>
    %2 = tpu.matmul %0, %1, %cst {dimension_numbers = #tpu.dot_dimension_numbers<[1], [0], [0], [1], [0, 0, 1, 1], [], []>} : vector<8x32xbf16>, vector<32x512xbf16>, vector<8x512xf32> -> vector<8x512xf32>
    %c0_3 = arith.constant 0 : index
    %c0_4 = arith.constant 0 : index
    %3 = vector.load %arg3[%c0_3, %c0_4] : memref<1x512xf32, #tpu.memory_space<vmem>>, vector<1x512xf32>
    %4 = vector.broadcast %3 : vector<1x512xf32> to vector<8x512xf32>
    %5 = arith.addf %2, %4 : vector<8x512xf32>
    %cst_5 = arith.constant 0.000000e+00 : f32
    %6 = vector.broadcast %cst_5 : f32 to vector<8x512xf32>
    %7 = arith.maximumf %5, %6 : vector<8x512xf32>
    %8 = arith.truncf %7 : vector<8x512xf32> to vector<8x512xbf16>
    %c0_6 = arith.constant 0 : index
    %c0_7 = arith.constant 0 : index
    %9 = vector.load %arg4[%c0_6, %c0_7] : memref<512x128xbf16, #tpu.memory_space<vmem>>, vector<512x128xbf16>
    %cst_8 = arith.constant dense<0.000000e+00> : vector<8x128xf32>
    %10 = tpu.matmul %8, %9, %cst_8 {dimension_numbers = #tpu.dot_dimension_numbers<[1], [0], [0], [1], [0, 0, 1, 1], [], []>} : vector<8x512xbf16>, vector<512x128xbf16>, vector<8x128xf32> -> vector<8x128xf32>
    %c0_9 = arith.constant 0 : index
    %c0_10 = arith.constant 0 : index
    %11 = vector.load %arg5[%c0_9, %c0_10] : memref<1x128xf32, #tpu.memory_space<vmem>>, vector<1x128xf32>
    %12 = vector.broadcast %11 : vector<1x128xf32> to vector<8x128xf32>
    %13 = arith.addf %10, %12 : vector<8x128xf32>
    %c0_11 = arith.constant 0 : index
    %c0_12 = arith.constant 0 : index
    %14 = vector.load %arg6[%c0_11, %c0_12] : memref<8x128xf32, #tpu.memory_space<vmem>>, vector<8x128xf32>
    tpu.vector_store %arg6[%c0_11, %c0_12], %13 {strides = array<i32>} : memref<8x128xf32, #tpu.memory_space<vmem>>, vector<8x128xf32>,
    return
  }
  func.func @transform_0(%arg0: i32) -> (i32, i32) {
    %c0_i32 = arith.constant 0 : i32
    %c0_i32_0 = arith.constant 0 : i32
    return %arg0, %c0_i32 : i32, i32
  }
  func.func @transform_1(%arg0: i32) -> (i32, i32) {
    %c0_i32 = arith.constant 0 : i32
    %c0_i32_0 = arith.constant 0 : i32
    %c0_i32_1 = arith.constant 0 : i32
    return %c0_i32, %c0_i32_0 : i32, i32
  }
  func.func @transform_2(%arg0: i32) -> (i32, i32) {
    %c0_i32 = arith.constant 0 : i32
    %c0_i32_0 = arith.constant 0 : i32
    %c0_i32_1 = arith.constant 0 : i32
    return %c0_i32, %c0_i32_0 : i32, i32
  }
  func.func @transform_3(%arg0: i32) -> (i32, i32) {
    %c0_i32 = arith.constant 0 : i32
    %c0_i32_0 = arith.constant 0 : i32
    %c0_i32_1 = arith.constant 0 : i32
    return %c0_i32, %c0_i32_0 : i32, i32
  }
  func.func @transform_4(%arg0: i32) -> (i32, i32) {
    %c0_i32 = arith.constant 0 : i32
    %c0_i32_0 = arith.constant 0 : i32
    %c0_i32_1 = arith.constant 0 : i32
    return %c0_i32, %c0_i32_0 : i32, i32
  }
  func.func @transform_5(%arg0: i32) -> (i32, i32) {
    %c0_i32 = arith.constant 0 : i32
    %c0_i32_0 = arith.constant 0 : i32
    return %arg0, %c0_i32 : i32, i32
  }
}

</mosaic_0001>

<bundles_post_ra>
// kernel: tpu_custom_call.1
= control target key start
LH: loop header
LB: loop body
LE: loop exit
PB: predicated region body
PF: predicated region fallthrough
CT: control target
= control target key end

     0   :  { %10 = vsyncpa [#allocation3], 0  ;;  %s935_s0 = inlined_call_operand.hbm [shape: bf16[8,32], index: 0, kind: input, shape index: {}]   ;;  %s936_s1 = inlined_call_operand.hbm [shape: bf16[32,512], index: 1, kind: input, shape index: {}]   ;;  %s937_s2 = inlined_call_operand.hbm [shape: f32[1,512], index: 2, kind: input, shape index: {}]   ;;  %s938_s3 = inlined_call_operand.hbm [shape: bf16[512,128], index: 3, kind: input, shape index: {}]   ;;  %s939_s4 = inlined_call_operand.vmem [shape: f32[1,128], index: 4, kind: input, shape index: {}]   ;;  %s940_s5 = inlined_call_operand.hbm [shape: f32[8,128], index: 5, kind: output, shape index: {}]  }
   0x1   :  { %11 = vsyncpa [#allocation6], 0 }
   0x2   :  { %12 = vsyncpa [#allocation9], 0  ;;  %s29_s20 = sshll.u32 %s936_s1, 4  ;;  %s30_s20 = int_to_ptr.hbm [resolvable:$true] %s29_s20 }
   0x3   :  { %13 = vsyncpa [#allocation4], 0  ;;  %s878_s21 = smov [#allocation5]   ;;  %s19_s25 = sshll.u32 %s935_s0, 4  ;;  %s20_s25 = int_to_ptr.hbm [resolvable:$true] %s19_s25 }
   0x4   :  { %s31_s22 = sshll.u32 %s878_s21, 4  ;;  %s879_s26 = smov 256   ;;  %s32_s22 = int_to_ptr.vmem [resolvable:$true] %s31_s22 }
   0x5   :  { %s880_s27 = smov 16   ;;  %s881_s28 = smov [#allocation2]  }
   0x6   :  { %37 = dma.hbm_to_vmem [thread:$0]  %s30_s20, 1024, %s32_s22, [#allocation6], %s879_s26, %s879_s26, %s880_s27  }
   0x7   :  { %s21_s29 = sshll.u32 %s881_s28, 4  ;;  %s43_s7 = sshll.u32 %s937_s2, 4  ;;  %s22_s29 = int_to_ptr.vmem [resolvable:$true] %s21_s29  ;;  %s44_s7 = int_to_ptr.hbm [resolvable:$true] %s43_s7 }
   0x8   :  { %24 = dma.hbm_to_vmem [thread:$0]  %s20_s25, 64, %s22_s29, [#allocation3]  }
   0x9   :  { %s53_s9 = sshll.u32 %s938_s3, 4  ;;  %s882_s10 = smov [#allocation7]   ;;  %s54_s9 = int_to_ptr.hbm [resolvable:$true] %s53_s9 }
   0xa   :  { %s45_s11 = sshll.u32 %s882_s10, 4  ;;  %s883_s0 = smov [#allocation8]   ;;  %s46_s11 = int_to_ptr.vmem [resolvable:$true] %s45_s11 }
   0xb   :  { %48 = dma.hbm_to_vmem [thread:$0]  %s44_s7, 64, %s46_s11, [#allocation6]  }
   0xc   :  { %s55_s12 = sshll.u32 %s883_s0, 4  ;;  %s884_s13 = smov 64   ;;  %s56_s12 = int_to_ptr.vmem [resolvable:$true] %s55_s12 }
   0xd   :  { %s885_s14 = smov 4  }
   0xe   :  { %61 = dma.hbm_to_vmem [thread:$0]  %s54_s9, 4096, %s56_s12, [#allocation9], %s884_s13, %s884_s13, %s885_s14  }
   0xf   :  { %870 = dma.done.wait [#allocation3], 64  }
  0x10   :  { %871 = vsyncadd [#allocation3], 4294967232 }
  0x11   :  { %872 = dma.done.wait [#allocation6], 1088  }
  0x12   :  { %873 = vsyncadd [#allocation6], 4294966208 }
  0x13   :  { %874 = dma.done.wait [#allocation9], 4096  }
  0x14   :  { %875 = vsyncadd [#allocation9], 4294963200  ;;  %v562_v0 = vld [vmem:[#allocation5 + $0x28] sm:$0xf]  ;;  %v707_v1 = vld [vmem:[#allocation5 + $0x34] sm:$0xf0] }
  0x15   :  { %v705_v2 = vld [vmem:[#allocation5 + $0x2c] sm:$0xf]  ;;  %v563_v3 = vor.u32 %v707_v1, %v562_v0  ;;  %v564_v4 = vld [vmem:[#allocation5 + $0x38] sm:$0xf0]  ;;  %v554_v5 = vld [vmem:[#allocation5 + $0x20] sm:$0xf] }
  0x16   :  { %v706_v6 = vld [vmem:[#allocation5 + $0x2c] sm:$0xf0]  ;;  %v567_v7 = vor.u32 %v705_v2, %v564_v4  ;;  %v704_v9 = vld [vmem:[#allocation5 + $0x24] sm:$0xf]  ;;  %v556_v10 = vld [vmem:[#allocation5 + $0x30] sm:$0xf0] }
  0x17   :  { %v555_v8 = vor.u32 %v706_v6, %v554_v5  ;;  %v546_v11 = vld [vmem:[#allocation5 + $0x8] sm:$0xf]  ;;  %176 = vmatpush.bf16.msra.mxu2 %v563_v3  ;;  %v559_v12 = vor.u32 %v704_v9, %v556_v10  ;;  %v703_v13 = vld [vmem:[#allocation5 + $0x14] sm:$0xf0]  ;;  %v701_v14 = vld [vmem:[#allocation5 + $0xc] sm:$0xf] }
  0x18   :  { %v548_v15 = vld [vmem:[#allocation5 + $0x18] sm:$0xf0]  ;;  %189 = vmatpush.bf16.msra.mxu3 %v567_v7  ;;  %v547_v16 = vor.u32 %v703_v13, %v546_v11  ;;  %v538_v18 = vld [vmem:[#allocation5] sm:$0xf]  ;;  %v702_v19 = vld [vmem:[#allocation5 + $0xc] sm:$0xf0] }
  0x19   :  { %150 = vmatpush.bf16.msra.mxu0 %v555_v8  ;;  %v551_v17 = vor.u32 %v701_v14, %v548_v15  ;;  %163 = vmatpush.bf16.msra.mxu1 %v559_v12  ;;  %v539_v20 = vor.u32 %v702_v19, %v538_v18  ;;  %v700_v21 = vld [vmem:[#allocation5 + $0x4] sm:$0xf]  ;;  %v540_v22 = vld [vmem:[#allocation5 + $0x10] sm:$0xf0]  ;;  %v715_v23 = vld [vmem:[#allocation8 + $0x38] sm:$0xff]  ;;  %vm140_vm0 = vcmask 261120  }
  0x1a   :  { %v543_v24 = vor.u32 %v700_v21, %v540_v22  ;;  %v723_v25 = vld [vmem:[#allocation8 + $0x78] sm:$0xff]  ;;  %v714_v28 = vld [vmem:[#allocation8 + $0x30] sm:$0xff]  ;;  %v713_v32 = vld [vmem:[#allocation8 + $0x28] sm:$0xff]  ;;  %s886_s15 = smov [#allocation10]   ;;  %s524_s19 = sshll.u32 %s940_s5, 4  ;;  %s525_s19 = int_to_ptr.hbm [resolvable:$true] %s524_s19 }
  0x1b   :  { %177 = vmatpush.bf16.msra.mxu2 %v547_v16  ;;  %v81_v26 = vld [vmem:[#allocation2] sm:$0xf]  ;;  %v722_v30 = vld [vmem:[#allocation8 + $0x70] sm:$0xff]  ;;  %v721_v34 = vld [vmem:[#allocation8 + $0x68] sm:$0xff]  ;;  %s522_s16 = sshll.u32 %s886_s15, 4  ;;  %s523_s16 = int_to_ptr.vmem [resolvable:$true] %s522_s16 }
  0x1c   :  { %190 = vmatpush.bf16.msra.mxu3 %v551_v17  ;;  %v731_v27 = vld [vmem:[#allocation8 + $0xb8] sm:$0xff]  ;;  %v730_v31 = vld [vmem:[#allocation8 + $0xb0] sm:$0xff]  ;;  %v729_v35 = vld [vmem:[#allocation8 + $0xa8] sm:$0xff] }
  0x1d   :  { %151 = vmatpush.bf16.msra.mxu0 %v539_v20  ;;  %164 = vmatpush.bf16.msra.mxu1 %v543_v24  ;;  %v739_v29 = vld [vmem:[#allocation8 + $0xf8] sm:$0xff]  ;;  %v738_v33 = vld [vmem:[#allocation8 + $0xf0] sm:$0xff]  ;;  %v712_v36 = vld [vmem:[#allocation8 + $0x20] sm:$0xff] }
  0x1e   :  { %570 = vmatmul.msk.bf16.vlgmr.msra.gmra.mxu2 %vm140_vm0, %v81_v26  ;;  %v737_v37 = vld [vmem:[#allocation8 + $0xe8] sm:$0xff]  ;;  %v720_v38 = vld [vmem:[#allocation8 + $0x60] sm:$0xff]  ;;  %v711_v40 = vld [vmem:[#allocation8 + $0x18] sm:$0xff] }
  0x1f   :  { %571 = vmatmul.msk.bf16.vlgmr.msra.gmra.mxu3 %vm140_vm0, %v81_v26  ;;  %490 = vmatpush.bf16.msrb.mxu2 %v731_v27  ;;  %v728_v39 = vld [vmem:[#allocation8 + $0xa0] sm:$0xff]  ;;  %v719_v42 = vld [vmem:[#allocation8 + $0x58] sm:$0xff]  ;;  %v710_v44 = vld [vmem:[#allocation8 + $0x10] sm:$0xff] }
  0x20   :  { %568 = vmatmul.msk.bf16.vlgmr.msra.gmra.mxu0 %vm140_vm0, %v81_v26  ;;  %569 = vmatmul.msk.bf16.vlgmr.msra.gmra.mxu1 %vm140_vm0, %v81_v26  ;;  %v736_v41 = vld [vmem:[#allocation8 + $0xe0] sm:$0xff]  ;;  %v727_v43 = vld [vmem:[#allocation8 + $0x98] sm:$0xff]  ;;  %v718_v46 = vld [vmem:[#allocation8 + $0x50] sm:$0xff] }
  0x21   :  { %464 = vmatpush.bf16.msrb.mxu0 %v715_v23  ;;  %477 = vmatpush.bf16.msrb.mxu1 %v723_v25  ;;  %v735_v45 = vld [vmem:[#allocation8 + $0xd8] sm:$0xff]  ;;  %v709_v47 = vld [vmem:[#allocation8 + $0x8] sm:$0xff]  ;;  %v726_v48 = vld [vmem:[#allocation8 + $0x90] sm:$0xff] }
  0x22   :  { %503 = vmatpush.bf16.msrb.mxu3 %v739_v29  ;;  %v734_v49 = vld [vmem:[#allocation8 + $0xd0] sm:$0xff]  ;;  %v717_v50 = vld [vmem:[#allocation8 + $0x48] sm:$0xff]  ;;  %v708_v51 = vld [vmem:[#allocation8] sm:$0xff] }
  0x23   :  { %491 = vmatpush.bf16.msrb.mxu2 %v730_v31  ;;  %v725_v52 = vld [vmem:[#allocation8 + $0x88] sm:$0xff]  ;;  %v716_v54 = vld [vmem:[#allocation8 + $0x40] sm:$0xff]  ;;  %v90_v57 = vld [vmem:[#allocation7] sm:$0xf] }
  0x24   :  { %v733_v53 = vld [vmem:[#allocation8 + $0xc8] sm:$0xff]  ;;  %v724_v55 = vld [vmem:[#allocation8 + $0x80] sm:$0xff]  ;;  %v92_v58 = vperm.slane %v90_v57, 0  ;;  %v93_v59 = vperm.slane %v90_v57, 1  ;;  %v94_v0 = vperm.slane %v90_v57, 2  ;;  %v95_v2 = vperm.slane %v90_v57, 3 }
  0x25   :  { %465 = vmatpush.bf16.msrb.mxu0 %v714_v28  ;;  %478 = vmatpush.bf16.msrb.mxu1 %v722_v30  ;;  %v732_v56 = vld [vmem:[#allocation8 + $0xc0] sm:$0xff]  ;;  %v749_v18 = vld [vmem:[%s939_s4] ss:$0 sm:$0xff] }
  0x26   :  { %504 = vmatpush.bf16.msrb.mxu3 %v738_v33 }
  0x27   :  { %492 = vmatpush.bf16.msrb.mxu2 %v729_v35 }
  0x29   :  { %466 = vmatpush.bf16.msrb.mxu0 %v713_v32  ;;  %479 = vmatpush.bf16.msrb.mxu1 %v721_v34 }
  0x2a   :  { %505 = vmatpush.bf16.msrb.mxu3 %v737_v37 }
  0x2b   :  { %493 = vmatpush.bf16.msrb.mxu2 %v728_v39 }
  0x2d   :  { %467 = vmatpush.bf16.msrb.mxu0 %v712_v36  ;;  %480 = vmatpush.bf16.msrb.mxu1 %v720_v38 }
  0x2e   :  { %506 = vmatpush.bf16.msrb.mxu3 %v736_v41 }
  0x2f   :  { %494 = vmatpush.bf16.msrb.mxu2 %v727_v43 }
  0x31   :  { %468 = vmatpush.bf16.msrb.mxu0 %v711_v40  ;;  %481 = vmatpush.bf16.msrb.mxu1 %v719_v42 }
  0x32   :  { %507 = vmatpush.bf16.msrb.mxu3 %v735_v45 }
  0x33   :  { %495 = vmatpush.bf16.msrb.mxu2 %v726_v48 }
  0x35   :  { %469 = vmatpush.bf16.msrb.mxu0 %v710_v44  ;;  %482 = vmatpush.bf16.msrb.mxu1 %v718_v46 }
  0x36   :  { %508 = vmatpush.bf16.msrb.mxu3 %v734_v49 }
  0x37   :  { %496 = vmatpush.bf16.msrb.mxu2 %v725_v52 }
  0x39   :  { %470 = vmatpush.bf16.msrb.mxu0 %v709_v47  ;;  %483 = vmatpush.bf16.msrb.mxu1 %v717_v50 }
  0x3a   :  { %509 = vmatpush.bf16.msrb.mxu3 %v733_v53 }
  0x3b   :  { %497 = vmatpush.bf16.msrb.mxu2 %v724_v55 }
  0x3d   :  { %471 = vmatpush.bf16.msrb.mxu0 %v708_v51  ;;  %484 = vmatpush.bf16.msrb.mxu1 %v716_v54 }
  0x3e   :  { %510 = vmatpush.bf16.msrb.mxu3 %v732_v56 }
  0x9d   :  { %v153_v60 = vpop.f32.mrf.mxu0  ;;  %v166_v62 = vpop.f32.mrf.mxu1 }
  0x9e   :  { %v154_v61 = vadd.f32 %v153_v60, %v92_v58  ;;  %v167_v63 = vadd.f32 %v166_v62, %v93_v59 }
  0xa0   :  { %v196_v1 = vmax.f32 %v154_v61, 0.0  ;;  %v197_v3 = vmax.f32 %v167_v63, 0.0 }
  0xa1   :  { %v179_v5 = vpop.f32.mrf.mxu2 }
  0xa2   :  { %v200_v4 = vpack.c.bf16 %v196_v1, %v196_v1  ;;  %v201_v6 = vpack.c.bf16 %v197_v3, %v197_v3  ;;  %v180_v7 = vadd.f32 %v179_v5, %v94_v0  ;;  %v192_v8 = vpop.f32.mrf.mxu3 }
  0xa3   :  { %v193_v9 = vadd.f32 %v192_v8, %v95_v2 }
  0xa4   :  { %472 = vmatmul.bf16.vlgmr.msrb.gmra.mxu0 %v200_v4  ;;  %v198_v10 = vmax.f32 %v180_v7, 0.0  ;;  %485 = vmatmul.bf16.vlgmr.msrb.gmra.mxu1 %v201_v6 }
  0xa5   :  { %v155_v11 = vpop.f32.mrf.mxu0  ;;  %v199_v12 = vmax.f32 %v193_v9, 0.0  ;;  %v168_v13 = vpop.f32.mrf.mxu1 }
  0xa6   :  { %v202_v14 = vpack.c.bf16 %v198_v10, %v198_v10 }
  0xa7   :  { %v203_v15 = vpack.c.bf16 %v199_v12, %v199_v12 }
  0xa8   :  { %498 = vmatmul.bf16.vlgmr.msrb.gmra.mxu2 %v202_v14 }
  0xa9   :  { %511 = vmatmul.bf16.vlgmr.msrb.gmra.mxu3 %v203_v15  ;;  %v181_v16 = vpop.f32.mrf.mxu2 }
  0xaa   :  { %v194_v17 = vpop.f32.mrf.mxu3 }
 0x121   :  { %v473_v19 = vpop.f32.mrf.mxu0  ;;  %v486_v20 = vpop.f32.mrf.mxu1 }
 0x122   :  { %v474_v21 = vadd.f32 %v749_v18, %v473_v19 }
 0x124   :  { %v487_v22 = vadd.f32 %v486_v20, %v474_v21 }
 0x129   :  { %v475_v23 = vpop.f32.mrf.mxu0  ;;  %v488_v24 = vpop.f32.mrf.mxu1 }
 0x12b   :  { %v499_v25 = vpop.f32.mrf.mxu2 }
 0x12c   :  { %v500_v26 = vadd.f32 %v499_v25, %v487_v22  ;;  %v512_v27 = vpop.f32.mrf.mxu3 }
 0x12e   :  { %v513_v28 = vadd.f32 %v512_v27, %v500_v26 }
 0x130   :  { %516 = vst [vmem:[#allocation10] sm:$0xff] %v513_v28 }
 0x131   :  { %527 = dma.vmem_to_hbm [thread:$0]  %s523_s16, 128, %s525_s19, [#allocation4]  }
 0x133   :  { %v501_v29 = vpop.f32.mrf.mxu2 }
 0x134   :  { %v514_v30 = vpop.f32.mrf.mxu3 }
 0x135   :  { %876 = dma.done.wait [#allocation4], 128  }
 0x136   :  { %877 = vsyncadd [#allocation4], 4294967168 }
 0x137   :  { %532 = vsyncpa [#allocation3], 1 }
 0x138   :  { %533 = vsyncpa [#allocation6], 1 }
 0x139   :  { %534 = vsyncpa [#allocation9], 1 }
 0x13a   :  { %535 = vsyncpa [#allocation4], 1 }

</bundles_post_ra>
